<compile_context>
chip_gen: v7x
topology: tpu7x:2x2x1
jax: 0.10.0
libtpu: 0.0.40
codegen_flags: <defaults>
</compile_context>

<pallas_src>
import math

import jax
import jax.numpy as jnp
from jax.experimental import pallas as pl
from jax.experimental.pallas import tpu as pltpu

_INV_SQRT2 = 1.0 / math.sqrt(2.0)


def _ffn_kernel(x_ref, w1_ref, b1_ref, w2_ref, b2_ref, o_ref, acc_ref):
    """One (row-tile, k-tile) step of the fused FFN."""
    k = pl.program_id(1)

    @pl.when(k == 0)
    def _init():
        acc_ref[...] = jnp.zeros_like(acc_ref)

    # First matmul chunk on the MXU, f32 accumulation; bias + exact erf-GELU
    # (matches torch.nn.functional.gelu default) computed in f32.
    h = jnp.dot(x_ref[...], w1_ref[...], preferred_element_type=jnp.float32)
    h = h + b1_ref[...].astype(jnp.float32)
    h = 0.5 * h * (1.0 + jax.lax.erf(h * _INV_SQRT2))

    # TODO(synk): dropout p>0 would need pltpu.prng_seed/prng_random_bits
    # masking here; the module default p=0 is the identity.

    # Second matmul chunk, accumulated into the resident f32 scratch.
    acc_ref[...] += jnp.dot(h.astype(w2_ref.dtype), w2_ref[...],
                            preferred_element_type=jnp.float32)

    @pl.when(k == pl.num_programs(1) - 1)
    def _finalize():
        o_ref[...] = (acc_ref[...] + b2_ref[...].astype(jnp.float32)).astype(
            o_ref.dtype)


def _round_up(v, m):
    return (v + m - 1) // m * m


def _pick_tile_k(d_ff, max_tile_k):
    """Largest lane-aligned (multiple of 128) divisor of d_ff <= max_tile_k,
    or the full d_ff when it is small / not 128-aligned."""
    if d_ff <= max_tile_k or d_ff % 128 != 0:
        return d_ff
    start = max_tile_k - max_tile_k % 128
    for cand in range(start, 127, -128):
        if d_ff % cand == 0:
            return cand
    return d_ff


def _build_ffn_call(n_rows, d_model, d_ff, tile_n, tile_k, out_dtype,
                    x_itemsize, w_itemsize, single_buffer_weights):
    num_row_tiles = n_rows // tile_n
    num_k_tiles = d_ff // tile_k
    weights_const = (num_k_tiles == 1)  # weight block index never changes

    def w_mode(always_const):
        if single_buffer_weights and (weights_const or always_const):
            return dict(pipeline_mode=pl.Buffered(1))
        return {}

    in_specs = [
        pl.BlockSpec((tile_n, d_model), lambda i, k: (i, 0)),               # x rows
        pl.BlockSpec((d_model, tile_k), lambda i, k: (0, k), **w_mode(False)),  # W1
        pl.BlockSpec((1, tile_k), lambda i, k: (0, k), **w_mode(False)),        # b1
        pl.BlockSpec((tile_k, d_model), lambda i, k: (k, 0), **w_mode(False)),  # W2
        pl.BlockSpec((1, d_model), lambda i, k: (0, 0), **w_mode(True)),        # b2
    ]
    out_specs = pl.BlockSpec((tile_n, d_model), lambda i, k: (i, 0))

    # --- VMEM budget estimate (bytes) ---------------------------------------
    wbuf = 1 if (single_buffer_weights and weights_const) else 2
    est = (
        2 * tile_n * d_model * x_itemsize                      # x (double-buffered)
        + 2 * tile_n * d_model * x_itemsize                    # out
        + wbuf * (d_model * tile_k + tile_k * d_model) * w_itemsize  # W1 + W2 blocks
        + 2 * (tile_k + d_model) * w_itemsize                  # biases
        + tile_n * d_model * 4                                 # f32 accumulator
        + tile_n * tile_k * 4                                  # GELU intermediate
    )
    vmem_limit = int(min(max(2 * est, 32 * 1024 * 1024), 64 * 1024 * 1024))

    # --- advisory cost estimate for the XLA scheduler -----------------------
    flops = 4 * n_rows * d_model * d_ff                        # two matmuls
    weight_bytes = (2 * d_model * d_ff + d_ff + d_model) * w_itemsize
    weight_passes = 1 if weights_const else num_row_tiles
    bytes_accessed = int(2 * n_rows * d_model * x_itemsize
                         + weight_passes * weight_bytes)
    cost = pl.CostEstimate(flops=int(flops),
                           transcendentals=int(n_rows * d_ff),
                           bytes_accessed=bytes_accessed)

    return pl.pallas_call(
        _ffn_kernel,
        out_shape=jax.ShapeDtypeStruct((n_rows, d_model), out_dtype),
        grid=(num_row_tiles, num_k_tiles),
        in_specs=in_specs,
        out_specs=out_specs,
        scratch_shapes=[pltpu.VMEM((tile_n, d_model), jnp.float32)],
        compiler_params=pltpu.CompilerParams(
            dimension_semantics=("parallel", "arbitrary"),
            vmem_limit_bytes=vmem_limit,
        ),
        cost_estimate=cost,
    )


def positionwise_feed_forward(x, w1, b1, w2, b2, *, tile_n=256, max_tile_k=1024):
    """x: (..., d_model); w1: (d_model, d_ff); b1: (d_ff,);
    w2: (d_ff, d_model); b2: (d_model,).

    Weights are stored pre-transposed relative to torch (w1 = W1.T, w2 = W2.T)
    so the kernel does plain row-major matmuls on the MXU.  For peak MXU
    throughput pass bf16 x/weights; accumulation is always f32.
    """
    d_model = x.shape[-1]
    d_ff = w1.shape[1]
    lead_shape = x.shape[:-1]
    n = math.prod(lead_shape) if lead_shape else 1
    x2 = x.reshape(n, d_model)

    # Row tile: fixed size (default 256), multiple of 8 sublanes; pad ragged N.
    tile_n = max(8, min(tile_n, _round_up(n, 8)))
    tile_n = _round_up(tile_n, 8)
    n_pad = _round_up(n, tile_n)
    if n_pad != n:
        x2 = jnp.pad(x2, ((0, n_pad - n), (0, 0)))

    tile_k = _pick_tile_k(d_ff, max_tile_k)

    b1_2d = b1.reshape(1, d_ff)
    b2_2d = b2.reshape(1, d_model)
    args = (x2, w1, b1_2d, w2, b2_2d)

    x_item = x2.dtype.itemsize
    w_item = w1.dtype.itemsize
    try:
        # Preferred: single-buffer grid-constant weight/bias blocks.
        out = _build_ffn_call(n_pad, d_model, d_ff, tile_n, tile_k, x.dtype,
                              x_item, w_item, True)(*args)
    except Exception:
        # Fallback if this Pallas build rejects pl.Buffered(1): default
        # double-buffering (slightly more VMEM, same results).
        out = _build_ffn_call(n_pad, d_model, d_ff, tile_n, tile_k, x.dtype,
                              x_item, w_item, False)(*args)

    if n_pad != n:
        out = out[:n]
    return out.reshape(*lead_shape, d_model)


def _reference(x, w1, b1, w2, b2):
    h = jnp.dot(x, w1) + b1
    h = jax.nn.gelu(h, approximate=False)
    return jnp.dot(h, w2) + b2


if __name__ == "__main__":
    key = jax.random.PRNGKey(0)
    k_x, k_w1, k_b1, k_w2, k_b2 = jax.random.split(key, 5)

    # Small demo shapes (real transformer sizes should pad d_model/d_ff to
    # multiples of 128 for lane-dense MXU passes and unmasked stores).
    batch, seq, d_model, d_ff = 2, 8, 32, 64

    x = jax.random.normal(k_x, (batch, seq, d_model), dtype=jnp.float32)

    # Deterministic parameter init (PyTorch Linear-style uniform bounds).
    bound1 = 1.0 / math.sqrt(d_model)
    bound2 = 1.0 / math.sqrt(d_ff)
    w1 = jax.random.uniform(k_w1, (d_model, d_ff), jnp.float32, -bound1, bound1)
    b1 = jax.random.uniform(k_b1, (d_ff,), jnp.float32, -bound1, bound1)
    w2 = jax.random.uniform(k_w2, (d_ff, d_model), jnp.float32, -bound2, bound2)
    b2 = jax.random.uniform(k_b2, (d_model,), jnp.float32, -bound2, bound2)

    # tile_n=8 so the 16-row demo actually exercises multiple pipelined steps.
    y = positionwise_feed_forward(x, w1, b1, w2, b2, tile_n=8)
    y = jax.block_until_ready(y)

    y_ref = _reference(x, w1, b1, w2, b2)
    assert y.shape == (batch, seq, d_model)
    assert jnp.allclose(y, y_ref, atol=1e-5, rtol=1e-5), "mismatch vs reference"

    print("KERNEL_OK")
</pallas_src>

<mosaic_0001>
module attributes {stable_mosaic.version = 11 : i64} {
  func.func @_ffn_kernel(%arg0: i32, %arg1: i32, %arg2: memref<8x32xf32, #tpu.memory_space<vmem>>, %arg3: memref<32x64xf32, #tpu.memory_space<vmem>>, %arg4: memref<1x64xf32, #tpu.memory_space<vmem>>, %arg5: memref<64x32xf32, #tpu.memory_space<vmem>>, %arg6: memref<1x32xf32, #tpu.memory_space<vmem>>, %arg7: memref<8x32xf32, #tpu.memory_space<vmem>>, %arg8: memref<8x32xf32, #tpu.memory_space<vmem>>) attributes {dimension_semantics = [#tpu.dimension_semantics<parallel>, #tpu.dimension_semantics<arbitrary>], iteration_bounds = array<i64: 2, 1>, scalar_prefetch = 0 : i64, scratch_operands = 1 : i64, tpu.core_type = #tpu.core_type<tc>, window_params = [{transform_indices = @transform_0, window_bounds = array<i64: 8, 32>}, {pipeline_mode = #tpu.pipeline_mode<synchronous>, transform_indices = @transform_1, window_bounds = array<i64: 32, 64>}, {pipeline_mode = #tpu.pipeline_mode<synchronous>, transform_indices = @transform_2, window_bounds = array<i64: 1, 64>}, {pipeline_mode = #tpu.pipeline_mode<synchronous>, transform_indices = @transform_3, window_bounds = array<i64: 64, 32>}, {pipeline_mode = #tpu.pipeline_mode<synchronous>, transform_indices = @transform_4, window_bounds = array<i64: 1, 32>}, {transform_indices = @transform_5, window_bounds = array<i64: 8, 32>}]} {
    %c0_i32 = arith.constant 0 : i32
    %0 = arith.cmpi eq, %arg1, %c0_i32 : i32
    %1 = arith.extui %0 : i1 to i32
    %c0_i32_0 = arith.constant 0 : i32
    %2 = arith.cmpi ne, %1, %c0_i32_0 : i32
    scf.if %2 {
      %cst_18 = arith.constant 0.000000e+00 : f32
      %25 = vector.broadcast %cst_18 : f32 to vector<8x32xf32>
      %c0_19 = arith.constant 0 : index
      %c0_20 = arith.constant 0 : index
      %26 = vector.load %arg8[%c0_19, %c0_20] : memref<8x32xf32, #tpu.memory_space<vmem>>, vector<8x32xf32>
      tpu.vector_store %arg8[%c0_19, %c0_20], %25 {strides = array<i32>} : memref<8x32xf32, #tpu.memory_space<vmem>>, vector<8x32xf32>,
    } else {
    }
    %c0 = arith.constant 0 : index
    %c0_1 = arith.constant 0 : index
    %3 = vector.load %arg2[%c0, %c0_1] : memref<8x32xf32, #tpu.memory_space<vmem>>, vector<8x32xf32>
    %c0_2 = arith.constant 0 : index
    %c0_3 = arith.constant 0 : index
    %4 = vector.load %arg3[%c0_2, %c0_3] : memref<32x64xf32, #tpu.memory_space<vmem>>, vector<32x64xf32>
    %cst = arith.constant dense<0.000000e+00> : vector<8x64xf32>
    %5 = tpu.matmul %3, %4, %cst {dimension_numbers = #tpu.dot_dimension_numbers<[1], [0], [0], [1], [0, 0, 1, 1], [], []>} : vector<8x32xf32>, vector<32x64xf32>, vector<8x64xf32> -> vector<8x64xf32>
    %c0_4 = arith.constant 0 : index
    %c0_5 = arith.constant 0 : index
    %6 = vector.load %arg4[%c0_4, %c0_5] : memref<1x64xf32, #tpu.memory_space<vmem>>, vector<1x64xf32>
    %7 = vector.broadcast %6 : vector<1x64xf32> to vector<8x64xf32>
    %8 = arith.addf %5, %7 : vector<8x64xf32>
    %cst_6 = arith.constant 5.000000e-01 : f32
    %9 = vector.broadcast %cst_6 : f32 to vector<8x64xf32>
    %10 = arith.mulf %9, %8 : vector<8x64xf32>
    %cst_7 = arith.constant 0.707106769 : f32
    %11 = vector.broadcast %cst_7 : f32 to vector<8x64xf32>
    %12 = arith.mulf %8, %11 : vector<8x64xf32>
    %13 = math.erf %12 : vector<8x64xf32>
    %cst_8 = arith.constant 1.000000e+00 : f32
    %14 = vector.broadcast %cst_8 : f32 to vector<8x64xf32>
    %15 = arith.addf %14, %13 : vector<8x64xf32>
    %16 = arith.mulf %10, %15 : vector<8x64xf32>
    %c0_9 = arith.constant 0 : index
    %c0_10 = arith.constant 0 : index
    %17 = vector.load %arg8[%c0_9, %c0_10] : memref<8x32xf32, #tpu.memory_space<vmem>>, vector<8x32xf32>
    %c0_11 = arith.constant 0 : index
    %c0_12 = arith.constant 0 : index
    %18 = vector.load %arg5[%c0_11, %c0_12] : memref<64x32xf32, #tpu.memory_space<vmem>>, vector<64x32xf32>
    %cst_13 = arith.constant dense<0.000000e+00> : vector<8x32xf32>
    %19 = tpu.matmul %16, %18, %cst_13 {dimension_numbers = #tpu.dot_dimension_numbers<[1], [0], [0], [1], [0, 0, 1, 1], [], []>} : vector<8x64xf32>, vector<64x32xf32>, vector<8x32xf32> -> vector<8x32xf32>
    %20 = arith.addf %17, %19 : vector<8x32xf32>
    %c0_14 = arith.constant 0 : index
    %c0_15 = arith.constant 0 : index
    %21 = vector.load %arg8[%c0_14, %c0_15] : memref<8x32xf32, #tpu.memory_space<vmem>>, vector<8x32xf32>
    tpu.vector_store %arg8[%c0_14, %c0_15], %20 {strides = array<i32>} : memref<8x32xf32, #tpu.memory_space<vmem>>, vector<8x32xf32>,
    %c0_i32_16 = arith.constant 0 : i32
    %22 = arith.cmpi eq, %arg1, %c0_i32_16 : i32
    %23 = arith.extui %22 : i1 to i32
    %c0_i32_17 = arith.constant 0 : i32
    %24 = arith.cmpi ne, %23, %c0_i32_17 : i32
    scf.if %24 {
      %c0_18 = arith.constant 0 : index
      %c0_19 = arith.constant 0 : index
      %25 = vector.load %arg8[%c0_18, %c0_19] : memref<8x32xf32, #tpu.memory_space<vmem>>, vector<8x32xf32>
      %c0_20 = arith.constant 0 : index
      %c0_21 = arith.constant 0 : index
      %26 = vector.load %arg6[%c0_20, %c0_21] : memref<1x32xf32, #tpu.memory_space<vmem>>, vector<1x32xf32>
      %27 = vector.broadcast %26 : vector<1x32xf32> to vector<8x32xf32>
      %28 = arith.addf %25, %27 : vector<8x32xf32>
      %c0_22 = arith.constant 0 : index
      %c0_23 = arith.constant 0 : index
      %29 = vector.load %arg7[%c0_22, %c0_23] : memref<8x32xf32, #tpu.memory_space<vmem>>, vector<8x32xf32>
      tpu.vector_store %arg7[%c0_22, %c0_23], %28 {strides = array<i32>} : memref<8x32xf32, #tpu.memory_space<vmem>>, vector<8x32xf32>,
    } else {
    }
    return
  }
  func.func @transform_0(%arg0: i32, %arg1: i32) -> (i32, i32) {
    %c0_i32 = arith.constant 0 : i32
    %c0_i32_0 = arith.constant 0 : i32
    return %arg0, %c0_i32 : i32, i32
  }
  func.func @transform_1(%arg0: i32, %arg1: i32) -> (i32, i32) {
    %c0_i32 = arith.constant 0 : i32
    %c0_i32_0 = arith.constant 0 : i32
    return %c0_i32, %arg1 : i32, i32
  }
  func.func @transform_2(%arg0: i32, %arg1: i32) -> (i32, i32) {
    %c0_i32 = arith.constant 0 : i32
    %c0_i32_0 = arith.constant 0 : i32
    return %c0_i32, %arg1 : i32, i32
  }
  func.func @transform_3(%arg0: i32, %arg1: i32) -> (i32, i32) {
    %c0_i32 = arith.constant 0 : i32
    %c0_i32_0 = arith.constant 0 : i32
    return %arg1, %c0_i32 : i32, i32
  }
  func.func @transform_4(%arg0: i32, %arg1: i32) -> (i32, i32) {
    %c0_i32 = arith.constant 0 : i32
    %c0_i32_0 = arith.constant 0 : i32
    %c0_i32_1 = arith.constant 0 : i32
    return %c0_i32, %c0_i32_0 : i32, i32
  }
  func.func @transform_5(%arg0: i32, %arg1: i32) -> (i32, i32) {
    %c0_i32 = arith.constant 0 : i32
    %c0_i32_0 = arith.constant 0 : i32
    return %arg0, %c0_i32 : i32, i32
  }
}

module attributes {stable_mosaic.version = 11 : i64} {
  func.func @_ffn_kernel(%arg0: i32, %arg1: i32, %arg2: memref<8x32xf32, #tpu.memory_space<vmem>>, %arg3: memref<32x64xf32, #tpu.memory_space<vmem>>, %arg4: memref<1x64xf32, #tpu.memory_space<vmem>>, %arg5: memref<64x32xf32, #tpu.memory_space<vmem>>, %arg6: memref<1x32xf32, #tpu.memory_space<vmem>>, %arg7: memref<8x32xf32, #tpu.memory_space<vmem>>, %arg8: memref<8x32xf32, #tpu.memory_space<vmem>>) attributes {dimension_semantics = [#tpu.dimension_semantics<parallel>, #tpu.dimension_semantics<arbitrary>], iteration_bounds = array<i64: 2, 1>, scalar_prefetch = 0 : i64, scratch_operands = 1 : i64, tpu.core_type = #tpu.core_type<tc>, window_params = [{transform_indices = @transform_0, window_bounds = array<i64: 8, 32>}, {transform_indices = @transform_1, window_bounds = array<i64: 32, 64>}, {transform_indices = @transform_2, window_bounds = array<i64: 1, 64>}, {transform_indices = @transform_3, window_bounds = array<i64: 64, 32>}, {pipeline_mode = #tpu.pipeline_mode<synchronous>, transform_indices = @transform_4, window_bounds = array<i64: 1, 32>}, {transform_indices = @transform_5, window_bounds = array<i64: 8, 32>}]} {
    %c0_i32 = arith.constant 0 : i32
    %0 = arith.cmpi eq, %arg1, %c0_i32 : i32
    %1 = arith.extui %0 : i1 to i32
    %c0_i32_0 = arith.constant 0 : i32
    %2 = arith.cmpi ne, %1, %c0_i32_0 : i32
    scf.if %2 {
      %cst_18 = arith.constant 0.000000e+00 : f32
      %25 = vector.broadcast %cst_18 : f32 to vector<8x32xf32>
      %c0_19 = arith.constant 0 : index
      %c0_20 = arith.constant 0 : index
      %26 = vector.load %arg8[%c0_19, %c0_20] : memref<8x32xf32, #tpu.memory_space<vmem>>, vector<8x32xf32>
      tpu.vector_store %arg8[%c0_19, %c0_20], %25 {strides = array<i32>} : memref<8x32xf32, #tpu.memory_space<vmem>>, vector<8x32xf32>,
    } else {
    }
    %c0 = arith.constant 0 : index
    %c0_1 = arith.constant 0 : index
    %3 = vector.load %arg2[%c0, %c0_1] : memref<8x32xf32, #tpu.memory_space<vmem>>, vector<8x32xf32>
    %c0_2 = arith.constant 0 : index
    %c0_3 = arith.constant 0 : index
    %4 = vector.load %arg3[%c0_2, %c0_3] : memref<32x64xf32, #tpu.memory_space<vmem>>, vector<32x64xf32>
    %cst = arith.constant dense<0.000000e+00> : vector<8x64xf32>
    %5 = tpu.matmul %3, %4, %cst {dimension_numbers = #tpu.dot_dimension_numbers<[1], [0], [0], [1], [0, 0, 1, 1], [], []>} : vector<8x32xf32>, vector<32x64xf32>, vector<8x64xf32> -> vector<8x64xf32>
    %c0_4 = arith.constant 0 : index
    %c0_5 = arith.constant 0 : index
    %6 = vector.load %arg4[%c0_4, %c0_5] : memref<1x64xf32, #tpu.memory_space<vmem>>, vector<1x64xf32>
    %7 = vector.broadcast %6 : vector<1x64xf32> to vector<8x64xf32>
    %8 = arith.addf %5, %7 : vector<8x64xf32>
    %cst_6 = arith.constant 5.000000e-01 : f32
    %9 = vector.broadcast %cst_6 : f32 to vector<8x64xf32>
    %10 = arith.mulf %9, %8 : vector<8x64xf32>
    %cst_7 = arith.constant 0.707106769 : f32
    %11 = vector.broadcast %cst_7 : f32 to vector<8x64xf32>
    %12 = arith.mulf %8, %11 : vector<8x64xf32>
    %13 = math.erf %12 : vector<8x64xf32>
    %cst_8 = arith.constant 1.000000e+00 : f32
    %14 = vector.broadcast %cst_8 : f32 to vector<8x64xf32>
    %15 = arith.addf %14, %13 : vector<8x64xf32>
    %16 = arith.mulf %10, %15 : vector<8x64xf32>
    %c0_9 = arith.constant 0 : index
    %c0_10 = arith.constant 0 : index
    %17 = vector.load %arg8[%c0_9, %c0_10] : memref<8x32xf32, #tpu.memory_space<vmem>>, vector<8x32xf32>
    %c0_11 = arith.constant 0 : index
    %c0_12 = arith.constant 0 : index
    %18 = vector.load %arg5[%c0_11, %c0_12] : memref<64x32xf32, #tpu.memory_space<vmem>>, vector<64x32xf32>
    %cst_13 = arith.constant dense<0.000000e+00> : vector<8x32xf32>
    %19 = tpu.matmul %16, %18, %cst_13 {dimension_numbers = #tpu.dot_dimension_numbers<[1], [0], [0], [1], [0, 0, 1, 1], [], []>} : vector<8x64xf32>, vector<64x32xf32>, vector<8x32xf32> -> vector<8x32xf32>
    %20 = arith.addf %17, %19 : vector<8x32xf32>
    %c0_14 = arith.constant 0 : index
    %c0_15 = arith.constant 0 : index
    %21 = vector.load %arg8[%c0_14, %c0_15] : memref<8x32xf32, #tpu.memory_space<vmem>>, vector<8x32xf32>
    tpu.vector_store %arg8[%c0_14, %c0_15], %20 {strides = array<i32>} : memref<8x32xf32, #tpu.memory_space<vmem>>, vector<8x32xf32>,
    %c0_i32_16 = arith.constant 0 : i32
    %22 = arith.cmpi eq, %arg1, %c0_i32_16 : i32
    %23 = arith.extui %22 : i1 to i32
    %c0_i32_17 = arith.constant 0 : i32
    %24 = arith.cmpi ne, %23, %c0_i32_17 : i32
    scf.if %24 {
      %c0_18 = arith.constant 0 : index
      %c0_19 = arith.constant 0 : index
      %25 = vector.load %arg8[%c0_18, %c0_19] : memref<8x32xf32, #tpu.memory_space<vmem>>, vector<8x32xf32>
      %c0_20 = arith.constant 0 : index
      %c0_21 = arith.constant 0 : index
      %26 = vector.load %arg6[%c0_20, %c0_21] : memref<1x32xf32, #tpu.memory_space<vmem>>, vector<1x32xf32>
      %27 = vector.broadcast %26 : vector<1x32xf32> to vector<8x32xf32>
      %28 = arith.addf %25, %27 : vector<8x32xf32>
      %c0_22 = arith.constant 0 : index
      %c0_23 = arith.constant 0 : index
      %29 = vector.load %arg7[%c0_22, %c0_23] : memref<8x32xf32, #tpu.memory_space<vmem>>, vector<8x32xf32>
      tpu.vector_store %arg7[%c0_22, %c0_23], %28 {strides = array<i32>} : memref<8x32xf32, #tpu.memory_space<vmem>>, vector<8x32xf32>,
    } else {
    }
    return
  }
  func.func @transform_0(%arg0: i32, %arg1: i32) -> (i32, i32) {
    %c0_i32 = arith.constant 0 : i32
    %c0_i32_0 = arith.constant 0 : i32
    return %arg0, %c0_i32 : i32, i32
  }
  func.func @transform_1(%arg0: i32, %arg1: i32) -> (i32, i32) {
    %c0_i32 = arith.constant 0 : i32
    %c0_i32_0 = arith.constant 0 : i32
    return %c0_i32, %arg1 : i32, i32
  }
  func.func @transform_2(%arg0: i32, %arg1: i32) -> (i32, i32) {
    %c0_i32 = arith.constant 0 : i32
    %c0_i32_0 = arith.constant 0 : i32
    return %c0_i32, %arg1 : i32, i32
  }
  func.func @transform_3(%arg0: i32, %arg1: i32) -> (i32, i32) {
    %c0_i32 = arith.constant 0 : i32
    %c0_i32_0 = arith.constant 0 : i32
    return %arg1, %c0_i32 : i32, i32
  }
  func.func @transform_4(%arg0: i32, %arg1: i32) -> (i32, i32) {
    %c0_i32 = arith.constant 0 : i32
    %c0_i32_0 = arith.constant 0 : i32
    %c0_i32_1 = arith.constant 0 : i32
    return %c0_i32, %c0_i32_0 : i32, i32
  }
  func.func @transform_5(%arg0: i32, %arg1: i32) -> (i32, i32) {
    %c0_i32 = arith.constant 0 : i32
    %c0_i32_0 = arith.constant 0 : i32
    return %arg0, %c0_i32 : i32, i32
  }
}

</mosaic_0001>

<bundles_post_ra>
// kernel: tpu_custom_call.1
= control target key start
LH: loop header
LB: loop body
LE: loop exit
PB: predicated region body
PF: predicated region fallthrough
CT: control target
= control target key end

     0   :  { %10 = vsyncpa [#allocation4], 0  ;;  %s1015_s0 = inlined_call_operand.vmem [shape: f32[16,32], index: 0, kind: input, shape index: {}]   ;;  %s1016_s1 = inlined_call_operand.vmem [shape: f32[32,64], index: 1, kind: input, shape index: {}]   ;;  %s1017_s2 = inlined_call_operand.vmem [shape: f32[1,64], index: 2, kind: input, shape index: {}]   ;;  %s1018_s3 = inlined_call_operand.vmem [shape: f32[64,32], index: 3, kind: input, shape index: {}]   ;;  %s1019_s4 = inlined_call_operand.vmem [shape: f32[1,32], index: 4, kind: input, shape index: {}]   ;;  %s1020_s5 = inlined_call_operand.hbm [shape: f32[16,32], index: 5, kind: output, shape index: {}]  }
   0x1   :  { %12 = vsyncpa [#allocation4 + $0x1], 0  ;;  %s857_s18 = smov 0   ;;  %s859_s19 = smov 0  }
   0x2   :  { %s861_s20 = smov 0   ;;  %s863_s21 = smov 0  }
   0x3   :  { %s865_s22 = smov 0   ;;  %s867_s23 = smov 0  }
   0x4 LB: > { %s603_s24 = sadd.s32 4294967295, %s821_s23   ;;  %s604_s25 = sadd.s32 4294967294, %s821_s23   ;;  %s821_s23 = sphi %s867_s23, %s18_s23   ;;  %s817_s22 = sphi %s865_s22, %s1027_s22   ;;  %s813_s21 = sphi %s863_s21, %s1026_s21   ;;  %s809_s20 = sphi %s861_s20, %s1025_s20   ;;  %s805_s19 = sphi %s859_s19, %s1024_s19   ;;  %s801_s18 = sphi %s857_s18, %s1023_s18  }
   0x5   : > { %s30_s26 = sadd.s32 1, %s817_s22  ;;  %s162_s27 = sadd.s32 1, %s809_s20 }
   0x6   : > { %p32_p0 = scmp.ge.s32.totalorder %s30_s26, 2  ;;  %p172_p1 = scmp.ne.s32.totalorder %s809_s20, %s805_s19 }
   0x7   : > { %p173_p2 = scmp.eq.s32.totalorder %s603_s24, 1  ;;  %p178_p3 = scmp.ne.s32.totalorder %s805_s19, %s801_s18 }
   0x8   : > { %s1029_s26 = smov (%p32_p0, %s30_s26), 0  ;;  %p179_p5 = scmp.eq.s32.totalorder %s604_s25, 1 }
   0x9   : > { %p897_p4 = por %p173_p2, %p172_p1  ;;  %s159_s29 = ssub.s32 %s817_s22, %s1029_s26 }
   0xa   : > { %p610_p6 = scmp.ge.s32.totalorder %s821_s23, 1  ;;  %p160_p7 = scmp.eq.s32.totalorder %s159_s29, 0 }
   0xb   : > { %p904_p8 = por %p179_p5, %p178_p3  ;;  %p229_p9 = scmp.lt.s32.totalorder %s821_s23, 3 }
   0xc   : > { %s910_s6 = scalar_select %p160_p7, %s809_s20, %s162_s27  }
   0xd   : > { %p230_p10 = pnand %p610_p6, %p229_p9 }
   0xe   : > { %v292_v0 = vld [vmem:[%s1016_s1] sm:$0xff] (!%p230_p10)  ;;  %v293_v1 = vld [vmem:[%s1016_s1 + $0x8] sm:$0xff] (!%p230_p10)  ;;  %v294_v2 = vld [vmem:[%s1016_s1 + $0x10] sm:$0xff] (!%p230_p10)  ;;  %v823_v3 = vmov (!%p230_p10), 0.0|0.0   ;;  %vm824_vm0 = vmmov (!%p230_p10), 0   ;;  %v825_v6 = vmov (!%p230_p10), 0.0  }
   0xf   : > { %233 = sbr.rel (%p230_p10) target bundleno = 496 (0x1f0), region = 40  ;;  %665 = vmatprep.subr.bf16.mxu0 (!%p230_p10), %v823_v3  ;;  %v666_v4 = vpack.c.bf16 (!%p230_p10), %v293_v1, %v292_v0  ;;  %v295_v5 = vld [vmem:[%s1016_s1 + $0x18] sm:$0xff] (!%p230_p10)  ;;  %643 = vmatprep.mubr.msk.f32.mxu0 (!%p230_p10), %vm824_vm0, %v825_v6  ;;  %p268_p11 = scmp.lt.s32.totalorder (!%p230_p10), %s813_s21, 1  ;;  %vm289_vm1 = vcmask (!%p230_p10), 261120   ;;  %v383_v9 = vld [vmem:[%s1018_s3] sm:$0xff] (!%p230_p10)  ;;  %v384_v10 = vld [vmem:[%s1018_s3 + $0x8] sm:$0xff] (!%p230_p10) }
  0x10   : > { %290 = vst.msk [vmem:[#allocation2] sm:$0xff] (!%p230_p10), %vm289_vm1, %v825_v6  ;;  %671 = vmatprep.subr.bf16.mxu1 (!%p230_p10), %v823_v3  ;;  %662 = vmatprep.mubr.msk.f32.mxu1 (!%p230_p10), %vm824_vm0, %v825_v6  ;;  %v669_v7 = vpack.c.bf16 (!%p230_p10), %v295_v5, %v294_v2  ;;  %v672_v11 = vpack.c.bf16 (!%p230_p10), %v384_v10, %v383_v9  ;;  %v385_v12 = vld [vmem:[%s1018_s3 + $0x10] sm:$0xff] (!%p230_p10)  ;;  %v386_v13 = vld [vmem:[%s1018_s3 + $0x18] sm:$0xff] (!%p230_p10)  ;;  %v387_v15 = vld [vmem:[%s1018_s3 + $0x20] sm:$0xff] (!%p230_p10)  ;;  %vm391_vm2 = vcmask (!%p230_p10), 523264   ;;  %s265_s8 = sand.u32 (!%p230_p10), 1, %s805_s19  }
  0x11   : > { %667 = vmatpush3.bf16.msra.mxu0 (!%p230_p10), %v666_v4  ;;  %v675_v14 = vpack.c.bf16 (!%p230_p10), %v386_v13, %v385_v12  ;;  %v388_v16 = vld [vmem:[%s1018_s3 + $0x28] sm:$0xff] (!%p230_p10)  ;;  %v389_v18 = vld [vmem:[%s1018_s3 + $0x30] sm:$0xff] (!%p230_p10)  ;;  %v390_v19 = vld [vmem:[%s1018_s3 + $0x38] sm:$0xff] (!%p230_p10)  ;;  %s611_s9 = sshll.u32 (!%p230_p10), %s265_s8, 3  ;;  %s618_s12 = sshll.u32 (!%p230_p10), %s813_s21, 7 }
  0x12   : > { %668 = vmatprep.subr.bf16.mxu0 (!%p230_p10), %v823_v3  ;;  %673 = vmatpush3.bf16.msra.mxu1 (!%p230_p10), %v672_v11  ;;  %v678_v17 = vpack.c.bf16 (!%p230_p10), %v388_v16, %v387_v15  ;;  %v681_v20 = vpack.c.bf16 (!%p230_p10), %v390_v19, %v389_v18  ;;  %v613_v21 = vld [vmem:[%s1017_s2] ss:$0 sm:$0xff] (!%p230_p10)  ;;  %s267_s13 = scalar_lea.vmem (!%p230_p10), [#allocation3], %s611_s9  ;;  %s967_s17 = scalar_lea.hbm (!%p230_p10), %s1020_s5, %s618_s12 }
  0x13   : > { %674 = vmatprep.subr.bf16.mxu1 (!%p230_p10), %v823_v3  ;;  %v616_v34 = vld [vmem:[%s1019_s4] ss:$0 sm:$0xff] (!%p230_p10)  ;;  %s494_s14 = sshll.u32 (!%p230_p10), %s267_s13, 4  ;;  %s481_s24 = scalar_lea.sflag (!%p230_p10), [#allocation4], %s265_s8  ;;  %s969_s14 = int_to_ptr.vmem [resolvable:$true] %s494_s14 }
  0x15   : > { %670 = vmatpush3.bf16.msra.mxu0 (!%p230_p10), %v669_v7 }
  0x16   : > { %s269_s15 = scalar_select %p268_p11, %s813_s21, 1  ;;  %676 = vmatpush3.bf16.msra.mxu1 %v675_v14 }
  0x17   : > { %677 = vmatprep.subr.bf16.mxu1 %v823_v3  ;;  %v382_v30 = vld [vmem:[#allocation2] sm:$0xff]  ;;  %s826_s21 = smov [#allocation3]  }
  0x18   : > { %s612_s16 = sshll.u32 %s269_s15, 3  ;;  %s747_s27 = sshll.u32 %s826_s21, 4  ;;  %s748_s27 = int_to_ptr.vmem [resolvable:$false] %s747_s27 }
  0x19   : > { %s271_s25 = scalar_lea.vmem %s1015_s0, %s612_s16  ;;  %s749_s29 = scalar_lea.vmem %s748_s27, 256 }
  0x1a   : > { %v291_v8 = vld [vmem:[%s271_s25] sm:$0xff]  ;;  %679 = vmatpush3.bf16.msra.mxu1 %v678_v17  ;;  %s743_s25 = scalar_lea.vmem %s969_s14, 128  ;;  %p750_p1 = scmp.lt.s32.totalorder %s969_s14, %s748_s27 }
  0x1b   : > { %644 = vmatmul.mubr.msk.f32.vlgmr.msra.gmra.mrb[0].mxu0 %vm289_vm1, %v291_v8  ;;  %680 = vmatprep.subr.bf16.mxu1 %v823_v3  ;;  %p744_p12 = scmp.ne.s32.totalorder %s969_s14, %s743_s25  ;;  %p751_p2 = scmp.lt.s32.totalorder %s749_s29, %s743_s25 }
  0x1d   : > { %p745_p13 = pnand %p744_p12, %p897_p4  ;;  %p752_p3 = por %p751_p2, %p750_p1 }
  0x1e   : > { %682 = vmatpush3.bf16.msra.mxu1 %v681_v20 }
  0x1f   : > { %p746_p0 = pneg %p745_p13 }
  0x21   : > { %p753_p5 = pnand %p752_p3, %p746_p0 }
  0xee   : > { %v373_v22 = vpop.f32.mrb[0].mxu0 }
  0xef   : > { %v374_v23 = vadd.f32 %v613_v21, %v373_v22  ;;  %v645_v24 = vpop.f32.mrb[1].mxu0 }
  0xf1   : > { %v378_v25 = vmul.f32 0.70710677, %v374_v23  ;;  %v377_v27 = vmul.f32 0.5, %v374_v23 }
  0xf3   : > { %741 = verf.f32 %v378_v25 }
  0xfd   : > { %v742_v26 = vpop.eup %741 }
  0xfe   : > { %v380_v28 = vadd.f32 1.0, %v742_v26 }
 0x100   : > { %v381_v29 = vmul.f32 %v380_v28, %v377_v27 }
 0x102   : > { %663 = vmatmul.mubr.msk.f32.vlgmr.msra.gmra.mrb[0].mxu1 %vm391_vm2, %v381_v29 }
 0x1d5   : > { %v461_v31 = vpop.f32.mrb[0].mxu1 }
 0x1d6   : > { %v465_v32 = vadd.f32 %v461_v31, %v382_v30  ;;  %v664_v33 = vpop.f32.mrb[1].mxu1 }
 0x1d8   : > { %466 = vst.msk [vmem:[#allocation2] sm:$0xff] %vm289_vm1, %v465_v32 }
 0x1df   : > { %v470_v35 = vld [vmem:[#allocation2] sm:$0xff] }
 0x1e0   : > { %v478_v36 = vadd.f32 %v616_v34, %v470_v35 }
 0x1e2   : > { %479 = vst.msk [vmem:[%s267_s13] sm:$0xff] %vm289_vm1, %v478_v36 }
 0x1e3   : > { %756 = shalt.err (!%p753_p5)
}
 0x1e4   : > { %s757_s7 = scalar_lea.hbm %s967_s17, 128  ;;  %s761_s10 = scalar_lea.hbm %s1020_s5, 256 }
 0x1e5   : > { %p758_p6 = scmp.ne.s32.totalorder %s967_s17, %s757_s7  ;;  %p762_p10 = scmp.lt.u32.totalorder %s967_s17, %s1020_s5 }
 0x1e6   : > { %p763_p11 = scmp.lt.u32.totalorder %s761_s10, %s757_s7  ;;  %p765_p13 = scmp.lt.u32.totalorder %s757_s7, %s967_s17 }
 0x1e7   : > { %p759_p7 = pnand %p758_p6, %p897_p4 }
 0x1e8   : > { %p764_p12 = por %p763_p11, %p762_p10 }
 0x1e9   : > { %p760_p9 = pneg %p759_p7 }
 0x1ea   : > { %p766_p0 = por %p765_p13, %p764_p12 }
 0x1ec   : > { %p767_p1 = pnand %p766_p0, %p760_p9 }
 0x1ee   : > { %770 = shalt.err (!%p767_p1)
}
 0x1ef   : > { %683 = dma.vmem_to_hbm [thread:$0]  (%p897_p4), %s969_s14, 128, %s967_s17, %s481_s24  }
 0x1f0 PF: > { %p689_p2 = scmp.ge.s32.totalorder %s821_s23, 2  ;;  %s506_s13 = sand.u32 1, %s801_s18  }
 0x1f1   : > { %s507_s15 = scalar_lea.sflag [#allocation4], %s506_s13 }
 0x1f2   : > { %p686_p3 = pnand %p689_p2, %p904_p8 }
 0x1f4   : > { %796 = dma.done.wait (!%p686_p3), %s507_s15, 128  }
 0x1f5   : > { %798 = vsyncadd (!%p686_p3), %s507_s15, 4294967168  ;;  %s18_s23 = sadd.s32 1, %s821_s23   ;;  %s1023_s18 = smov %s805_s19 }
 0x1f6   : > { %p15_p5 = scmp.ge.s32.totalorder %s18_s23, 4   ;;  %s1024_s19 = smov %s809_s20 }
 0x1f7   : > { %s1025_s20 = smov %s910_s6  ;;  %s1026_s21 = smov %s817_s22 }
 0x1f8   : > { %s1027_s22 = smov %s1029_s26  ;;  %17 = sbr.rel (!%p15_p5) target bundleno = 4 (0x4), region = 92 }
 0x1ff   :  { %512 = vsyncpa [#allocation4], 1 }
 0x200   :  { %514 = vsyncpa [#allocation4 + $0x1], 1 }

// kernel: tpu_custom_call.1
= control target key start
LH: loop header
LB: loop body
LE: loop exit
PB: predicated region body
PF: predicated region fallthrough
CT: control target
= control target key end

     0   :  { %10 = vsyncpa [#allocation4], 0  ;;  %s1015_s0 = inlined_call_operand.vmem [shape: f32[16,32], index: 0, kind: input, shape index: {}]   ;;  %s1016_s1 = inlined_call_operand.vmem [shape: f32[32,64], index: 1, kind: input, shape index: {}]   ;;  %s1017_s2 = inlined_call_operand.vmem [shape: f32[1,64], index: 2, kind: input, shape index: {}]   ;;  %s1018_s3 = inlined_call_operand.vmem [shape: f32[64,32], index: 3, kind: input, shape index: {}]   ;;  %s1019_s4 = inlined_call_operand.vmem [shape: f32[1,32], index: 4, kind: input, shape index: {}]   ;;  %s1020_s5 = inlined_call_operand.hbm [shape: f32[16,32], index: 5, kind: output, shape index: {}]  }
   0x1   :  { %12 = vsyncpa [#allocation4 + $0x1], 0  ;;  %s857_s18 = smov 0   ;;  %s859_s19 = smov 0  }
   0x2   :  { %s861_s20 = smov 0   ;;  %s863_s21 = smov 0  }
   0x3   :  { %s865_s22 = smov 0   ;;  %s867_s23 = smov 0  }
   0x4 LB: > { %s603_s24 = sadd.s32 4294967295, %s821_s23   ;;  %s604_s25 = sadd.s32 4294967294, %s821_s23   ;;  %s821_s23 = sphi %s867_s23, %s18_s23   ;;  %s817_s22 = sphi %s865_s22, %s1027_s22   ;;  %s813_s21 = sphi %s863_s21, %s1026_s21   ;;  %s809_s20 = sphi %s861_s20, %s1025_s20   ;;  %s805_s19 = sphi %s859_s19, %s1024_s19   ;;  %s801_s18 = sphi %s857_s18, %s1023_s18  }
   0x5   : > { %s30_s26 = sadd.s32 1, %s817_s22  ;;  %s162_s27 = sadd.s32 1, %s809_s20 }
   0x6   : > { %p32_p0 = scmp.ge.s32.totalorder %s30_s26, 2  ;;  %p172_p1 = scmp.ne.s32.totalorder %s809_s20, %s805_s19 }
   0x7   : > { %p173_p2 = scmp.eq.s32.totalorder %s603_s24, 1  ;;  %p178_p3 = scmp.ne.s32.totalorder %s805_s19, %s801_s18 }
   0x8   : > { %s1029_s26 = smov (%p32_p0, %s30_s26), 0  ;;  %p179_p5 = scmp.eq.s32.totalorder %s604_s25, 1 }
   0x9   : > { %p897_p4 = por %p173_p2, %p172_p1  ;;  %s159_s29 = ssub.s32 %s817_s22, %s1029_s26 }
   0xa   : > { %p610_p6 = scmp.ge.s32.totalorder %s821_s23, 1  ;;  %p160_p7 = scmp.eq.s32.totalorder %s159_s29, 0 }
   0xb   : > { %p904_p8 = por %p179_p5, %p178_p3  ;;  %p229_p9 = scmp.lt.s32.totalorder %s821_s23, 3 }
   0xc   : > { %s910_s6 = scalar_select %p160_p7, %s809_s20, %s162_s27  }
   0xd   : > { %p230_p10 = pnand %p610_p6, %p229_p9 }
   0xe   : > { %v292_v0 = vld [vmem:[%s1016_s1] sm:$0xff] (!%p230_p10)  ;;  %v293_v1 = vld [vmem:[%s1016_s1 + $0x8] sm:$0xff] (!%p230_p10)  ;;  %v294_v2 = vld [vmem:[%s1016_s1 + $0x10] sm:$0xff] (!%p230_p10)  ;;  %v823_v3 = vmov (!%p230_p10), 0.0|0.0   ;;  %vm824_vm0 = vmmov (!%p230_p10), 0   ;;  %v825_v6 = vmov (!%p230_p10), 0.0  }
   0xf   : > { %233 = sbr.rel (%p230_p10) target bundleno = 496 (0x1f0), region = 40  ;;  %665 = vmatprep.subr.bf16.mxu0 (!%p230_p10), %v823_v3  ;;  %v666_v4 = vpack.c.bf16 (!%p230_p10), %v293_v1, %v292_v0  ;;  %v295_v5 = vld [vmem:[%s1016_s1 + $0x18] sm:$0xff] (!%p230_p10)  ;;  %643 = vmatprep.mubr.msk.f32.mxu0 (!%p230_p10), %vm824_vm0, %v825_v6  ;;  %p268_p11 = scmp.lt.s32.totalorder (!%p230_p10), %s813_s21, 1  ;;  %vm289_vm1 = vcmask (!%p230_p10), 261120   ;;  %v383_v9 = vld [vmem:[%s1018_s3] sm:$0xff] (!%p230_p10)  ;;  %v384_v10 = vld [vmem:[%s1018_s3 + $0x8] sm:$0xff] (!%p230_p10) }
  0x10   : > { %290 = vst.msk [vmem:[#allocation2] sm:$0xff] (!%p230_p10), %vm289_vm1, %v825_v6  ;;  %671 = vmatprep.subr.bf16.mxu1 (!%p230_p10), %v823_v3  ;;  %662 = vmatprep.mubr.msk.f32.mxu1 (!%p230_p10), %vm824_vm0, %v825_v6  ;;  %v669_v7 = vpack.c.bf16 (!%p230_p10), %v295_v5, %v294_v2  ;;  %v672_v11 = vpack.c.bf16 (!%p230_p10), %v384_v10, %v383_v9  ;;  %v385_v12 = vld [vmem:[%s1018_s3 + $0x10] sm:$0xff] (!%p230_p10)  ;;  %v386_v13 = vld [vmem:[%s1018_s3 + $0x18] sm:$0xff] (!%p230_p10)  ;;  %v387_v15 = vld [vmem:[%s1018_s3 + $0x20] sm:$0xff] (!%p230_p10)  ;;  %vm391_vm2 = vcmask (!%p230_p10), 523264   ;;  %s265_s8 = sand.u32 (!%p230_p10), 1, %s805_s19  }
  0x11   : > { %667 = vmatpush3.bf16.msra.mxu0 (!%p230_p10), %v666_v4  ;;  %v675_v14 = vpack.c.bf16 (!%p230_p10), %v386_v13, %v385_v12  ;;  %v388_v16 = vld [vmem:[%s1018_s3 + $0x28] sm:$0xff] (!%p230_p10)  ;;  %v389_v18 = vld [vmem:[%s1018_s3 + $0x30] sm:$0xff] (!%p230_p10)  ;;  %v390_v19 = vld [vmem:[%s1018_s3 + $0x38] sm:$0xff] (!%p230_p10)  ;;  %s611_s9 = sshll.u32 (!%p230_p10), %s265_s8, 3  ;;  %s618_s12 = sshll.u32 (!%p230_p10), %s813_s21, 7 }
  0x12   : > { %668 = vmatprep.subr.bf16.mxu0 (!%p230_p10), %v823_v3  ;;  %673 = vmatpush3.bf16.msra.mxu1 (!%p230_p10), %v672_v11  ;;  %v678_v17 = vpack.c.bf16 (!%p230_p10), %v388_v16, %v387_v15  ;;  %v681_v20 = vpack.c.bf16 (!%p230_p10), %v390_v19, %v389_v18  ;;  %v613_v21 = vld [vmem:[%s1017_s2] ss:$0 sm:$0xff] (!%p230_p10)  ;;  %s267_s13 = scalar_lea.vmem (!%p230_p10), [#allocation3], %s611_s9  ;;  %s967_s17 = scalar_lea.hbm (!%p230_p10), %s1020_s5, %s618_s12 }
  0x13   : > { %674 = vmatprep.subr.bf16.mxu1 (!%p230_p10), %v823_v3  ;;  %v616_v34 = vld [vmem:[%s1019_s4] ss:$0 sm:$0xff] (!%p230_p10)  ;;  %s494_s14 = sshll.u32 (!%p230_p10), %s267_s13, 4  ;;  %s481_s24 = scalar_lea.sflag (!%p230_p10), [#allocation4], %s265_s8  ;;  %s969_s14 = int_to_ptr.vmem [resolvable:$true] %s494_s14 }
  0x15   : > { %670 = vmatpush3.bf16.msra.mxu0 (!%p230_p10), %v669_v7 }
  0x16   : > { %s269_s15 = scalar_select %p268_p11, %s813_s21, 1  ;;  %676 = vmatpush3.bf16.msra.mxu1 %v675_v14 }
  0x17   : > { %677 = vmatprep.subr.bf16.mxu1 %v823_v3  ;;  %v382_v30 = vld [vmem:[#allocation2] sm:$0xff]  ;;  %s826_s21 = smov [#allocation3]  }
  0x18   : > { %s612_s16 = sshll.u32 %s269_s15, 3  ;;  %s747_s27 = sshll.u32 %s826_s21, 4  ;;  %s748_s27 = int_to_ptr.vmem [resolvable:$false] %s747_s27 }
  0x19   : > { %s271_s25 = scalar_lea.vmem %s1015_s0, %s612_s16  ;;  %s749_s29 = scalar_lea.vmem %s748_s27, 256 }
  0x1a   : > { %v291_v8 = vld [vmem:[%s271_s25] sm:$0xff]  ;;  %679 = vmatpush3.bf16.msra.mxu1 %v678_v17  ;;  %s743_s25 = scalar_lea.vmem %s969_s14, 128  ;;  %p750_p1 = scmp.lt.s32.totalorder %s969_s14, %s748_s27 }
  0x1b   : > { %644 = vmatmul.mubr.msk.f32.vlgmr.msra.gmra.mrb[0].mxu0 %vm289_vm1, %v291_v8  ;;  %680 = vmatprep.subr.bf16.mxu1 %v823_v3  ;;  %p744_p12 = scmp.ne.s32.totalorder %s969_s14, %s743_s25  ;;  %p751_p2 = scmp.lt.s32.totalorder %s749_s29, %s743_s25 }
  0x1d   : > { %p745_p13 = pnand %p744_p12, %p897_p4  ;;  %p752_p3 = por %p751_p2, %p750_p1 }
  0x1e   : > { %682 = vmatpush3.bf16.msra.mxu1 %v681_v20 }
  0x1f   : > { %p746_p0 = pneg %p745_p13 }
  0x21   : > { %p753_p5 = pnand %p752_p3, %p746_p0 }
  0xee   : > { %v373_v22 = vpop.f32.mrb[0].mxu0 }
  0xef   : > { %v374_v23 = vadd.f32 %v613_v21, %v373_v22  ;;  %v645_v24 = vpop.f32.mrb[1].mxu0 }
  0xf1   : > { %v378_v25 = vmul.f32 0.70710677, %v374_v23  ;;  %v377_v27 = vmul.f32 0.5, %v374_v23 }
  0xf3   : > { %741 = verf.f32 %v378_v25 }
  0xfd   : > { %v742_v26 = vpop.eup %741 }
  0xfe   : > { %v380_v28 = vadd.f32 1.0, %v742_v26 }
 0x100   : > { %v381_v29 = vmul.f32 %v380_v28, %v377_v27 }
 0x102   : > { %663 = vmatmul.mubr.msk.f32.vlgmr.msra.gmra.mrb[0].mxu1 %vm391_vm2, %v381_v29 }
 0x1d5   : > { %v461_v31 = vpop.f32.mrb[0].mxu1 }
 0x1d6   : > { %v465_v32 = vadd.f32 %v461_v31, %v382_v30  ;;  %v664_v33 = vpop.f32.mrb[1].mxu1 }
 0x1d8   : > { %466 = vst.msk [vmem:[#allocation2] sm:$0xff] %vm289_vm1, %v465_v32 }
 0x1df   : > { %v470_v35 = vld [vmem:[#allocation2] sm:$0xff] }
 0x1e0   : > { %v478_v36 = vadd.f32 %v616_v34, %v470_v35 }
 0x1e2   : > { %479 = vst.msk [vmem:[%s267_s13] sm:$0xff] %vm289_vm1, %v478_v36 }
 0x1e3   : > { %756 = shalt.err (!%p753_p5)
}
 0x1e4   : > { %s757_s7 = scalar_lea.hbm %s967_s17, 128  ;;  %s761_s10 = scalar_lea.hbm %s1020_s5, 256 }
 0x1e5   : > { %p758_p6 = scmp.ne.s32.totalorder %s967_s17, %s757_s7  ;;  %p762_p10 = scmp.lt.u32.totalorder %s967_s17, %s1020_s5 }
 0x1e6   : > { %p763_p11 = scmp.lt.u32.totalorder %s761_s10, %s757_s7  ;;  %p765_p13 = scmp.lt.u32.totalorder %s757_s7, %s967_s17 }
 0x1e7   : > { %p759_p7 = pnand %p758_p6, %p897_p4 }
 0x1e8   : > { %p764_p12 = por %p763_p11, %p762_p10 }
 0x1e9   : > { %p760_p9 = pneg %p759_p7 }
 0x1ea   : > { %p766_p0 = por %p765_p13, %p764_p12 }
 0x1ec   : > { %p767_p1 = pnand %p766_p0, %p760_p9 }
 0x1ee   : > { %770 = shalt.err (!%p767_p1)
}
 0x1ef   : > { %683 = dma.vmem_to_hbm [thread:$0]  (%p897_p4), %s969_s14, 128, %s967_s17, %s481_s24  }
 0x1f0 PF: > { %p689_p2 = scmp.ge.s32.totalorder %s821_s23, 2  ;;  %s506_s13 = sand.u32 1, %s801_s18  }
 0x1f1   : > { %s507_s15 = scalar_lea.sflag [#allocation4], %s506_s13 }
 0x1f2   : > { %p686_p3 = pnand %p689_p2, %p904_p8 }
 0x1f4   : > { %796 = dma.done.wait (!%p686_p3), %s507_s15, 128  }
 0x1f5   : > { %798 = vsyncadd (!%p686_p3), %s507_s15, 4294967168  ;;  %s18_s23 = sadd.s32 1, %s821_s23   ;;  %s1023_s18 = smov %s805_s19 }
 0x1f6   : > { %p15_p5 = scmp.ge.s32.totalorder %s18_s23, 4   ;;  %s1024_s19 = smov %s809_s20 }
 0x1f7   : > { %s1025_s20 = smov %s910_s6  ;;  %s1026_s21 = smov %s817_s22 }
 0x1f8   : > { %s1027_s22 = smov %s1029_s26  ;;  %17 = sbr.rel (!%p15_p5) target bundleno = 4 (0x4), region = 92 }
 0x1ff   :  { %512 = vsyncpa [#allocation4], 1 }
 0x200   :  { %514 = vsyncpa [#allocation4 + $0x1], 1 }

</bundles_post_ra>
